<compile_context>
chip_gen: v5e
topology: v5e:2x2
jax: 0.10.0
libtpu: 0.0.40
codegen_flags: <defaults>
</compile_context>

<pallas_src>
import functools

import jax
import jax.numpy as jnp
import numpy as np
from jax.experimental import pallas as pl
from jax.experimental.pallas import tpu as pltpu


def _conv_stats_kernel(p_ref, w_ref, b_ref, conv_ref, stats_ref, *,
                       s_real, lane_tile):
    """Pass 1: one MXU matmul per spatial tile + BN-statistics accumulation.

    p_ref:     (K, TS)       bf16 im2col slab tile (K = KH*KW*C_in)
    w_ref:     (C_out, K)    bf16 folded weight slab
    b_ref:     (C_out, 1)    f32 conv bias
    conv_ref:  (C_out, TS)   f32 conv output tile (pre-BN)
    stats_ref: (C_out, 2)    f32 [sum, sum_sq] per channel, resident accumulator
    """
    t = pl.program_id(0)

    @pl.when(t == 0)
    def _init():
        stats_ref[...] = jnp.zeros_like(stats_ref)

    # Single K = KH*KW*C_in contraction (replaces 9 K=C_in matmuls).
    acc = jnp.dot(w_ref[...], p_ref[...], preferred_element_type=jnp.float32)
    acc = acc + b_ref[...]                       # (C_out, TS) + (C_out, 1)
    conv_ref[...] = acc                          # lane-dense unmasked store

    # Mask lane-padding columns out of the batch statistics.
    col = t * lane_tile + jax.lax.broadcasted_iota(jnp.int32, acc.shape, 1)
    valid = (col < s_real).astype(jnp.float32)
    av = acc * valid
    s1 = jnp.sum(av, axis=1, keepdims=True)          # (C_out, 1) sum
    s2 = jnp.sum(av * acc, axis=1, keepdims=True)    # (C_out, 1) sum of squares
    stats_ref[...] += jnp.concatenate([s1, s2], axis=1)


def _bn_softplus_kernel(conv_ref, scale_ref, shift_ref, o_ref):
    """Pass 2: folded BatchNorm (single FMA per element) + Softplus."""
    y = conv_ref[...] * scale_ref[...] + shift_ref[...]
    # torch.nn.Softplus(beta=1, threshold=20)
    sp = jnp.where(y > 20.0, y, jnp.log1p(jnp.exp(jnp.minimum(y, 20.0))))
    o_ref[...] = sp.astype(o_ref.dtype)


def dilconv_sp_forward(x_nchw, weight, bias, gamma, beta, *,
                       kernel_size, stride, padding, dilation,
                       eps=1e-5, lane_tile=256):
    """x_nchw: (N, C_in, H, W); weight: (C_out, C_in, KH, KW) (PyTorch layout)."""
    to_pad = (kernel_size - 1) // 2
    n, cin, _, _ = x_nchw.shape
    cout = weight.shape[0]
    kh = kw = kernel_size

    # ---- XLA glue: padding + im2col into a lane-dense 2-D slab -------------
    x = x_nchw.astype(jnp.float32)
    x = jnp.pad(x, ((0, 0), (0, 0), (to_pad, to_pad), (to_pad, to_pad)),
                mode='reflect')                                  # ReflectionPad2d
    x = jnp.pad(x, ((0, 0), (0, 0), (padding, padding), (padding, padding)))
    hp, wp = x.shape[2], x.shape[3]
    ho = (hp - dilation * (kh - 1) - 1) // stride + 1
    wo = (wp - dilation * (kw - 1) - 1) // stride + 1
    s = n * ho * wo
    k = cin * kh * kw

    taps = []
    for ih in range(kh):
        for iw in range(kw):
            h0, w0 = ih * dilation, iw * dilation
            taps.append(x[:, :,
                          h0:h0 + (ho - 1) * stride + 1:stride,
                          w0:w0 + (wo - 1) * stride + 1:stride])   # (N, Cin, Ho, Wo)
    p = jnp.stack(taps, axis=0).reshape(kh, kw, n, cin, ho, wo)
    p = jnp.transpose(p, (3, 0, 1, 2, 4, 5)).reshape(k, s)  # K=(cin,kh,kw), S=(n,ho,wo)

    ts = int(min(lane_tile, pl.cdiv(s, 128) * 128))
    s_pad = int(pl.cdiv(s, ts) * ts)
    if s_pad != s:
        p = jnp.pad(p, ((0, 0), (0, s_pad - s)))
    num_tiles = s_pad // ts

    p_bf16 = p.astype(jnp.bfloat16)
    w2 = weight.reshape(cout, k).astype(jnp.bfloat16)      # same (cin,kh,kw) K order
    b2 = bias.reshape(cout, 1).astype(jnp.float32)

    cp = pltpu.CompilerParams(dimension_semantics=("arbitrary",),
                              vmem_limit_bytes=16 * 1024 * 1024)

    # ---- Pass 1: conv (one MXU contraction / tile) + BN statistics ---------
    conv_out, stats = pl.pallas_call(
        functools.partial(_conv_stats_kernel, s_real=s, lane_tile=ts),
        out_shape=(jax.ShapeDtypeStruct((cout, s_pad), jnp.float32),
                   jax.ShapeDtypeStruct((cout, 2), jnp.float32)),
        grid=(num_tiles,),
        in_specs=[pl.BlockSpec((k, ts), lambda t: (0, t)),
                  pl.BlockSpec((cout, k), lambda t: (0, 0)),
                  pl.BlockSpec((cout, 1), lambda t: (0, 0))],
        out_specs=(pl.BlockSpec((cout, ts), lambda t: (0, t)),
                   pl.BlockSpec((cout, 2), lambda t: (0, 0))),
        compiler_params=cp,
    )(p_bf16, w2, b2)

    # ---- Fold BN into two per-channel scalars (tiny, done in XLA) ----------
    cnt = jnp.asarray(s, jnp.float32)
    mean = stats[:, 0] / cnt
    var = jnp.maximum(stats[:, 1] / cnt - mean * mean, 0.0)   # biased (training) var
    inv = jax.lax.rsqrt(var + eps)
    g = gamma.astype(jnp.float32)
    scale = (g * inv).reshape(cout, 1)
    shift = (beta.astype(jnp.float32) - mean * g * inv).reshape(cout, 1)

    # ---- Pass 2: normalize (single FMA) + softplus, lane-dense, parallel ---
    out2 = pl.pallas_call(
        _bn_softplus_kernel,
        out_shape=jax.ShapeDtypeStruct((cout, s_pad), jnp.float32),
        grid=(num_tiles,),
        in_specs=[pl.BlockSpec((cout, ts), lambda t: (0, t)),
                  pl.BlockSpec((cout, 1), lambda t: (0, 0)),
                  pl.BlockSpec((cout, 1), lambda t: (0, 0))],
        out_specs=pl.BlockSpec((cout, ts), lambda t: (0, t)),
        compiler_params=pltpu.CompilerParams(
            dimension_semantics=("parallel",),
            vmem_limit_bytes=16 * 1024 * 1024),
    )(conv_out, scale, shift)

    # (C_out, S) -> (N, C_out, Ho, Wo); cheap reshape/transpose in the wrapper.
    out = out2[:, :s].reshape(cout, n, ho, wo)
    return jnp.transpose(out, (1, 0, 2, 3))


def _reference(x_nchw, weight, bias, gamma, beta, *,
               kernel_size, stride, padding, dilation, eps=1e-5):
    """Pure-JAX reference of the same forward math (sanity check)."""
    to_pad = (kernel_size - 1) // 2
    x = jnp.pad(x_nchw, ((0, 0), (0, 0), (to_pad, to_pad), (to_pad, to_pad)),
                mode='reflect')
    y = jax.lax.conv_general_dilated(
        x.astype(jnp.float32), weight.astype(jnp.float32),
        window_strides=(stride, stride),
        padding=[(padding, padding), (padding, padding)],
        rhs_dilation=(dilation, dilation),
        dimension_numbers=('NCHW', 'OIHW', 'NCHW'))
    y = y + bias[None, :, None, None]
    mean = jnp.mean(y, axis=(0, 2, 3), keepdims=True)
    var = jnp.mean((y - mean) ** 2, axis=(0, 2, 3), keepdims=True)
    y = (y - mean) * jax.lax.rsqrt(var + eps)
    y = y * gamma[None, :, None, None] + beta[None, :, None, None]
    return jnp.where(y > 20.0, y, jnp.log1p(jnp.exp(jnp.minimum(y, 20.0))))


if __name__ == "__main__":
    # Module config: DilConv_SP(C_in=4, C_out=8, kernel_size=3, stride=1,
    #                           padding=1, dilation=2, act_fun='soft')
    C_in, C_out, K, STRIDE, DIL = 4, 8, 3, 1, 2
    TO_PAD = (K - 1) // 2

    key = jax.random.PRNGKey(0)
    kx, kw, kb = jax.random.split(key, 3)

    x = jax.random.normal(kx, (2, C_in, 16, 16), dtype=jnp.float32)

    fan_in = C_in * K * K
    bound = 1.0 / np.sqrt(fan_in)
    weight = jax.random.uniform(kw, (C_out, C_in, K, K), jnp.float32,
                                minval=-bound, maxval=bound)
    bias = jax.random.uniform(kb, (C_out,), jnp.float32,
                              minval=-bound, maxval=bound)
    gamma = jnp.ones((C_out,), jnp.float32)   # BatchNorm2d default affine
    beta = jnp.zeros((C_out,), jnp.float32)

    out = dilconv_sp_forward(x, weight, bias, gamma, beta,
                             kernel_size=K, stride=STRIDE, padding=TO_PAD,
                             dilation=DIL)
    out = jax.block_until_ready(out)

    ref = jax.block_until_ready(
        _reference(x, weight, bias, gamma, beta,
                   kernel_size=K, stride=STRIDE, padding=TO_PAD, dilation=DIL))

    assert out.shape == (2, C_out, 16, 16), out.shape
    assert np.allclose(np.asarray(out), np.asarray(ref), atol=3e-2, rtol=3e-2), (
        "mismatch vs reference")

    print("KERNEL_OK")
</pallas_src>

<mosaic_0001>
module attributes {stable_mosaic.version = 11 : i64} {
  func.func @_conv_stats_kernel(%arg0: i32, %arg1: memref<36x256xbf16, #tpu.memory_space<vmem>>, %arg2: memref<8x36xbf16, #tpu.memory_space<vmem>>, %arg3: memref<8x1xf32, #tpu.memory_space<vmem>>, %arg4: memref<8x256xf32, #tpu.memory_space<vmem>>, %arg5: memref<8x2xf32, #tpu.memory_space<vmem>>) attributes {dimension_semantics = [#tpu.dimension_semantics<arbitrary>], iteration_bounds = array<i64: 2>, scalar_prefetch = 0 : i64, scratch_operands = 0 : i64, tpu.core_type = #tpu.core_type<tc>, window_params = [{transform_indices = @transform_0, window_bounds = array<i64: 36, 256>}, {pipeline_mode = #tpu.pipeline_mode<synchronous>, transform_indices = @transform_1, window_bounds = array<i64: 8, 36>}, {pipeline_mode = #tpu.pipeline_mode<synchronous>, transform_indices = @transform_2, window_bounds = array<i64: 8, 1>}, {transform_indices = @transform_3, window_bounds = array<i64: 8, 256>}, {pipeline_mode = #tpu.pipeline_mode<synchronous>, transform_indices = @transform_4, window_bounds = array<i64: 8, 2>}]} {
    %c0_i32 = arith.constant 0 : i32
    %0 = arith.cmpi eq, %arg0, %c0_i32 : i32
    %1 = arith.extui %0 : i1 to i32
    %c0_i32_0 = arith.constant 0 : i32
    %2 = arith.cmpi ne, %1, %c0_i32_0 : i32
    scf.if %2 {
      %cst_14 = arith.constant 0.000000e+00 : f32
      %28 = vector.broadcast %cst_14 : f32 to vector<8x2xf32>
      %c0_15 = arith.constant 0 : index
      %c0_16 = arith.constant 0 : index
      %29 = vector.load %arg5[%c0_15, %c0_16] : memref<8x2xf32, #tpu.memory_space<vmem>>, vector<8x2xf32>
      tpu.vector_store %arg5[%c0_15, %c0_16], %28 {strides = array<i32>} : memref<8x2xf32, #tpu.memory_space<vmem>>, vector<8x2xf32>,
    } else {
    }
    %c0 = arith.constant 0 : index
    %c0_1 = arith.constant 0 : index
    %3 = vector.load %arg2[%c0, %c0_1] : memref<8x36xbf16, #tpu.memory_space<vmem>>, vector<8x36xbf16>
    %c0_2 = arith.constant 0 : index
    %c0_3 = arith.constant 0 : index
    %4 = vector.load %arg1[%c0_2, %c0_3] : memref<36x256xbf16, #tpu.memory_space<vmem>>, vector<36x256xbf16>
    %cst = arith.constant dense<0.000000e+00> : vector<8x256xf32>
    %5 = tpu.matmul %3, %4, %cst {dimension_numbers = #tpu.dot_dimension_numbers<[1], [0], [0], [1], [0, 0, 1, 1], [], []>} : vector<8x36xbf16>, vector<36x256xbf16>, vector<8x256xf32> -> vector<8x256xf32>
    %c0_4 = arith.constant 0 : index
    %c0_5 = arith.constant 0 : index
    %6 = vector.load %arg3[%c0_4, %c0_5] : memref<8x1xf32, #tpu.memory_space<vmem>>, vector<8x1xf32>
    %7 = vector.broadcast %6 : vector<8x1xf32> to vector<8x256xf32>
    %8 = arith.addf %5, %7 : vector<8x256xf32>
    %c0_6 = arith.constant 0 : index
    %c0_7 = arith.constant 0 : index
    %9 = vector.load %arg4[%c0_6, %c0_7] : memref<8x256xf32, #tpu.memory_space<vmem>>, vector<8x256xf32>
    tpu.vector_store %arg4[%c0_6, %c0_7], %8 {strides = array<i32>} : memref<8x256xf32, #tpu.memory_space<vmem>>, vector<8x256xf32>,
    %c256_i32 = arith.constant 256 : i32
    %10 = arith.muli %arg0, %c256_i32 : i32
    %11 = tpu.iota {dimensions = array<i32: 1>} : vector<8x256xi32>
    %12 = vector.broadcast %10 : i32 to vector<8x256xi32>
    %13 = arith.addi %12, %11 : vector<8x256xi32>
    %c512_i32 = arith.constant 512 : i32
    %14 = vector.broadcast %c512_i32 : i32 to vector<8x256xi32>
    %15 = arith.cmpi slt, %13, %14 : vector<8x256xi32>
    %16 = arith.extui %15 : vector<8x256xi1> to vector<8x256xi32>
    %17 = arith.sitofp %16 : vector<8x256xi32> to vector<8x256xf32>
    %18 = arith.mulf %8, %17 : vector<8x256xf32>
    %cst_8 = arith.constant dense<0.000000e+00> : vector<8xf32>
    %19 = vector.multi_reduction <add>, %18, %cst_8 [1] : vector<8x256xf32> to vector<8xf32>
    %20 = vector.shape_cast %19 : vector<8xf32> to vector<8x1xf32>
    %21 = arith.mulf %18, %8 : vector<8x256xf32>
    %cst_9 = arith.constant dense<0.000000e+00> : vector<8xf32>
    %22 = vector.multi_reduction <add>, %21, %cst_9 [1] : vector<8x256xf32> to vector<8xf32>
    %23 = vector.shape_cast %22 : vector<8xf32> to vector<8x1xf32>
    %c0_10 = arith.constant 0 : index
    %c0_11 = arith.constant 0 : index
    %24 = vector.load %arg5[%c0_10, %c0_11] : memref<8x2xf32, #tpu.memory_space<vmem>>, vector<8x2xf32>
    %25 = tpu.concatenate %20, %23 in 1 : vector<8x1xf32>, vector<8x1xf32> -> vector<8x2xf32>
    %26 = arith.addf %24, %25 : vector<8x2xf32>
    %c0_12 = arith.constant 0 : index
    %c0_13 = arith.constant 0 : index
    %27 = vector.load %arg5[%c0_12, %c0_13] : memref<8x2xf32, #tpu.memory_space<vmem>>, vector<8x2xf32>
    tpu.vector_store %arg5[%c0_12, %c0_13], %26 {strides = array<i32>} : memref<8x2xf32, #tpu.memory_space<vmem>>, vector<8x2xf32>,
    return
  }
  func.func @transform_0(%arg0: i32) -> (i32, i32) {
    %c0_i32 = arith.constant 0 : i32
    %c0_i32_0 = arith.constant 0 : i32
    return %c0_i32, %arg0 : i32, i32
  }
  func.func @transform_1(%arg0: i32) -> (i32, i32) {
    %c0_i32 = arith.constant 0 : i32
    %c0_i32_0 = arith.constant 0 : i32
    %c0_i32_1 = arith.constant 0 : i32
    return %c0_i32, %c0_i32_0 : i32, i32
  }
  func.func @transform_2(%arg0: i32) -> (i32, i32) {
    %c0_i32 = arith.constant 0 : i32
    %c0_i32_0 = arith.constant 0 : i32
    %c0_i32_1 = arith.constant 0 : i32
    return %c0_i32, %c0_i32_0 : i32, i32
  }
  func.func @transform_3(%arg0: i32) -> (i32, i32) {
    %c0_i32 = arith.constant 0 : i32
    %c0_i32_0 = arith.constant 0 : i32
    return %c0_i32, %arg0 : i32, i32
  }
  func.func @transform_4(%arg0: i32) -> (i32, i32) {
    %c0_i32 = arith.constant 0 : i32
    %c0_i32_0 = arith.constant 0 : i32
    %c0_i32_1 = arith.constant 0 : i32
    return %c0_i32, %c0_i32_0 : i32, i32
  }
}

</mosaic_0001>

<bundles_post_ra>
// kernel: tpu_custom_call.1
= control target key start
LH: loop header
LB: loop body
LE: loop exit
PB: predicated region body
PF: predicated region fallthrough
CT: control target
= control target key end

     0   :  { %10 = vsyncpa [#allocation3], 0  ;;  %s800_s0 = inlined_call_operand.hbm [shape: bf16[36,512], index: 0, kind: input, shape index: {}]   ;;  %s801_s1 = inlined_call_operand.vmem [shape: bf16[8,36], index: 1, kind: input, shape index: {}]   ;;  %s802_s2 = inlined_call_operand.vmem [shape: f32[8,1], index: 2, kind: input, shape index: {}]   ;;  %s803_s3 = inlined_call_operand.hbm [shape: f32[8,512], index: 3, kind: output, shape index: {0}]   ;;  %s804_s4 = inlined_call_operand.vmem [shape: f32[8,2], index: 4, kind: output, shape index: {1}]  }
   0x1   :  { %12 = vsyncpa [#allocation3 + $0x1], 0 }
   0x2   :  { %13 = vsyncpa [#allocation4], 0 }
   0x3   :  { %15 = vsyncpa [#allocation4 + $0x1], 0  ;;  %s647_s15 = smov 0   ;;  %s649_s16 = smov 0  }
   0x4   :  { %s651_s17 = smov 0   ;;  %s653_s18 = smov 0  }
   0x5 LB: > { %s668_s19 = sadd.s32 4294967295, %s614_s18   ;;  %s423_s20 = sadd.s32 4294967294, %s614_s18   ;;  %s614_s18 = sphi %s653_s18, %s812_s18   ;;  %s610_s17 = sphi %s651_s17, %s811_s17   ;;  %s606_s16 = sphi %s649_s16, %s810_s16   ;;  %s602_s15 = sphi %s647_s15, %s809_s15  }
   0x6   : > { %s672_s21 = sadd.s32 1, %s614_s18   ;;  %s28_s22 = sadd.s32 1, %s610_s17 }
   0x7   : > { %s25_s23 = ssub.s32 %s614_s18, %s672_s21  ;;  %p35_p0 = scmp.ne.s32.totalorder %s610_s17, %s606_s16 }
   0x8   : > { %p26_p1 = scmp.eq.s32.totalorder %s25_s23, 0  ;;  %p36_p2 = scmp.eq.s32.totalorder %s614_s18, 0 }
   0x9   : > { %p41_p3 = scmp.ne.s32.totalorder %s606_s16, %s602_s15  ;;  %p42_p4 = scmp.eq.s32.totalorder %s668_s19, 0 }
   0xa   : > { %s684_s24 = scalar_select %p26_p1, %s610_s17, %s28_s22  }
   0xb   : > { %p37_p5 = por %p36_p2, %p35_p0  ;;  %p686_p6 = por %p42_p4, %p41_p3 }
   0xc   : > { %p107_p7 = scmp.eq.s32.totalorder %s668_s19, 1  ;;  %p113_p8 = scmp.eq.s32.totalorder %s423_s20, 1 }
   0xd   : > { %p425_p9 = scmp.ge.s32.totalorder %s614_s18, 2  ;;  %p477_p10 = scmp.lt.s32.totalorder %s614_s18, 2 }
   0xe   : > { %p693_p11 = por %p107_p7, %p35_p0  ;;  %p697_p12 = por %p113_p8, %p41_p3 }
   0xf   : > { %s160_s28 = sand.u32 1, %s610_s17   ;;  %s457_s29 = sshll.u32 %s614_s18, 3 }
  0x10   : > { %s463_s30 = smul.u32 40, %s160_s28  ;;  %s169_s7 = scalar_lea.hbm %s800_s0, %s457_s29 }
  0x11   : > { %p706_p13 = pnand %p477_p10, %p37_p5  ;;  %s170_s9 = sshll.u32 %s169_s7, 4  ;;  %s171_s9 = int_to_ptr.hbm [resolvable:$true] %s170_s9 }
  0x12   : > { %s164_s10 = scalar_lea.vmem [#allocation2], %s463_s30  ;;  %p428_p0 = scmp.ge.s32.totalorder %s614_s18, 1 }
  0x13   : > { %s172_s11 = sshll.u32 %s164_s10, 4  ;;  %s161_s12 = scalar_lea.sflag [#allocation3], %s160_s28  ;;  %s173_s11 = int_to_ptr.vmem [resolvable:$true] %s172_s11 }
  0x14   : > { %s518_s13 = sshra.s32 %s171_s9, 4  ;;  %p522_p2 = pneg %p706_p13  ;;  %s519_s13 = int_to_ptr.hbm [resolvable:$true] %s518_s13 }
  0x15   : > { %s520_s14 = scalar_lea.hbm %s519_s13, 40  ;;  %s525_s23 = scalar_lea.hbm %s800_s0, 80 }
  0x16   : > { %p521_p1 = scmp.ne.s32.totalorder %s519_s13, %s520_s14  ;;  %p526_p5 = scmp.lt.s32.totalorder %s519_s13, %s800_s0 }
  0x17   : > { %p527_p7 = scmp.lt.s32.totalorder %s525_s23, %s520_s14 }
  0x18   : > { %p523_p3 = pnand %p522_p2, %p521_p1 }
  0x19   : > { %p528_p8 = por %p527_p7, %p526_p5 }
  0x1a   : > { %p524_p4 = pneg %p523_p3 }
  0x1c   : > { %p529_p10 = pnand %p528_p8, %p524_p4 }
  0x1e   : > { %532 = shalt.err (!%p529_p10)
}
  0x1f   : > { %s616_s28 = smov 256   ;;  %s617_s30 = smov 128  }
  0x20   : > { %s618_s6 = smov 8   ;;  %p180_p1 = scmp.lt.s32.totalorder %s614_s18, 3 }
  0x21   : > { %472 = dma.hbm_to_vmem [thread:$0]  (!%p706_p13), %s171_s9, 640, %s173_s11, %s161_s12, %s616_s28, %s617_s30, %s618_s6  }
  0x22   : > { %p181_p2 = pnand %p428_p0, %p180_p1 }
  0x23   : > { %s725_s7 = sand.u32 (!%p181_p2), 1, %s606_s16  }
  0x24   : > { %184 = sbr.rel (%p181_p2) target bundleno = 322 (0x142), region = 32  ;;  %s187_s13 = scalar_lea.sflag (!%p181_p2), [#allocation3], %s725_s7 }
  0x25   : > { %s464_s10 = smul.u32 (!%p181_p2), 40, %s725_s7 }
  0x27   : > { %s729_s14 = scalar_lea.vmem (!%p181_p2), [#allocation2], %s464_s10 }
  0x29   : > { %593 = dma.done.wait (%p686_p6), %s187_s13, 640  }
  0x2a   : > { %595 = vsyncadd (%p686_p6), %s187_s13, 4294966656  ;;  %s429_s8 = sshll.u32 %s725_s7, 4  ;;  %p430_p13 = scmp.ne.s32.totalorder %s668_s19, 0 }
  0x2b   : > { %s736_s9 = scalar_lea.vmem [#allocation5], %s429_s8 }
  0x2c   : > { %222 = sbr.rel (%p430_p13) target bundleno = 51 (0x33), region = 40 }
  0x31   : > { %vm223_vm0 = vcmask 15360   ;;  %v619_v0 = vmov 0.0  }
  0x32   : > { %224 = vst.msk [vmem:[%s804_s4] sm:$0xff] %vm223_vm0, %v619_v0 }
  0x33 PF: > { %v230_v1 = vld [vmem:[%s729_s14 + $0x20] sm:$0x33]  ;;  %vm266_vm1 = vcmask 1041408   ;;  %v441_v4 = vld [vmem:[%s729_s14 + $0x10] sm:$0xf]  ;;  %v620_v11 = vmov 0   ;;  %v302_v23 = vlaneseq }
  0x34   : > { %v250_v2 = vunpack.c.l.b16 %v230_v1  ;;  %v251_v3 = vunpack.c.h.b16 %v230_v1  ;;  %v461_v5 = vld [vmem:[%s729_s14 + $0x14] sm:$0xf0]  ;;  %v460_v8 = vld [vmem:[%s729_s14 + $0x14] sm:$0xf]  ;;  %v443_v9 = vld [vmem:[%s729_s14 + $0x18] sm:$0xf0]  ;;  %517 = vset.pattern.permute.xlu0 %v620_v11 }
  0x35   : > { %v231_v10 = vld [vmem:[%s802_s2] sm:$0xff]  ;;  %v442_v14 = vor.u32 %v461_v5, %v441_v4  ;;  %v446_v15 = vor.u32 %v460_v8, %v443_v9  ;;  %v459_v17 = vld [vmem:[%s729_s14 + $0x4] sm:$0xf0]  ;;  %v435_v19 = vld [vmem:[%s729_s14 + $0x8] sm:$0xf0]  ;;  %vm262_vm2 = vcmask 293888  }
  0x36   : > { %v256_v6 = vpack.c.b16 %v250_v2, %v250_v2  ;;  %v257_v7 = vpack.c.b16 %v251_v3, %v251_v3  ;;  %234 = vperm.xlu0 %517, %v231_v10   ;;  %v433_v16 = vld [vmem:[%s729_s14] sm:$0xf]  ;;  %v458_v18 = vld [vmem:[%s729_s14 + $0x4] sm:$0xf]  ;;  %v303_v24 = vand.u32 127, %v302_v23  ;;  %s449_s29 = sshll.u32 %s668_s19, 8 }
  0x37   : > { %v434_v20 = vor.u32 %v459_v17, %v433_v16  ;;  %v438_v21 = vor.u32 %v458_v18, %v435_v19  ;;  %v225_v22 = vld [vmem:[%s801_s1] sm:$0xf]  ;;  %v305_v26 = vstv %s449_s29  ;;  %s462_s5 = sshll.u32 %s668_s19, 4  ;;  %s344_s10 = sshll.u32 %s736_s9, 4  ;;  %v621_v32 = vmov 0.0   ;;  %s345_s10 = int_to_ptr.vmem [resolvable:$true] %s344_s10 }
  0x38   : > { %v268_v12 = vsel %vm266_vm1, %v256_v6, 0  ;;  %v271_v13 = vsel %vm266_vm1, %v257_v7, 0  ;;  %v304_v25 = vadd.s32 128, %v303_v24  ;;  %v306_v27 = vadd.s32 %v305_v26, %v303_v24  ;;  %s342_s6 = scalar_lea.hbm %s803_s3, %s462_s5  ;;  %s331_s19 = scalar_lea.sflag [#allocation4], %s725_s7 }
  0x39   : > { %278 = vmatpush.bf16.msra.mxu0 %v268_v12  ;;  %291 = vmatpush.bf16.msra.mxu1 %v271_v13  ;;  %s346_s13 = sshll.u32 %s342_s6, 4  ;;  %s568_s25 = scalar_lea.hbm %s803_s3, 32  ;;  %s347_s13 = int_to_ptr.hbm [resolvable:$true] %s346_s13 }
  0x3a   : > { %v307_v28 = vadd.s32 %v305_v26, %v304_v25  ;;  %vm308_vm3 = vcmp.lt.s32.totalorder %v306_v27, 512  ;;  %s562_s14 = sshra.s32 %s347_s13, 4  ;;  %s563_s14 = int_to_ptr.hbm [resolvable:$true] %s562_s14 }
  0x3b   : > { %v450_v33 = vsel %vm308_vm3, 1.0, %v621_v32  ;;  %s564_s8 = scalar_lea.hbm %s563_s14, 16  ;;  %p569_p4 = scmp.lt.s32.totalorder %s563_s14, %s803_s3 }
  0x3c   : > { %vm309_vm4 = vcmp.lt.s32.totalorder %v307_v28, 512  ;;  %p565_p6 = scmp.ne.s32.totalorder %s563_s14, %s564_s8  ;;  %p570_p5 = scmp.lt.s32.totalorder %s568_s25, %s564_s8 }
  0x3d   : > { %279 = vmatpush.bf16.msra.mxu0 %v442_v14  ;;  %292 = vmatpush.bf16.msra.mxu1 %v446_v15  ;;  %v451_v34 = vsel %vm309_vm4, 1.0, %v621_v32 }
  0x3e   : > { %p566_p0 = pnand %p565_p6, %p693_p11  ;;  %p571_p7 = por %p570_p5, %p569_p4 }
  0x40   : > { %p567_p3 = pneg %p566_p0 }
  0x41   : > { %280 = vmatpush.bf16.msra.mxu0 %v434_v20  ;;  %293 = vmatpush.bf16.msra.mxu1 %v438_v21 }
  0x42   : > { %p572_p8 = pnand %p571_p7, %p567_p3 }
  0x44   : > { %447 = vmatmul.msk.bf16.vlgmr.msra.gmra.mxu0 %vm262_vm2, %v225_v22  ;;  %448 = vmatmul.msk.bf16.vlgmr.msra.gmra.mxu1 %vm262_vm2, %v225_v22 }
  0xa8   : > { %v235_v29 = vpop.permute.xlu0 %234 }
  0xc1   : > { %v282_v30 = vpop.f32.mrf.mxu0  ;;  %v295_v31 = vpop.f32.mrf.mxu1 }
  0xc2   : > { %v283_v35 = vadd.f32 %v282_v30, %v235_v29  ;;  %v296_v36 = vadd.f32 %v295_v31, %v235_v29 }
  0xc4   : > { %299 = vst [vmem:[%s736_s9] sm:$0xff] %v283_v35  ;;  %v314_v37 = vmul.f32 %v450_v33, %v283_v35  ;;  %v315_v38 = vmul.f32 %v451_v34, %v296_v36 }
  0xc5   : > { %300 = vst [vmem:[%s736_s9 + $0x8] sm:$0xff] %v296_v36 }
  0xc6   : > { %v316_v39 = vadd.f32 %v315_v38, %v314_v37  ;;  %v319_v40 = vmul.f32 %v314_v37, %v283_v35  ;;  %v320_v41 = vmul.f32 %v315_v38, %v296_v36 }
  0xc7   : > { %575 = shalt.err (!%p572_p8)
}
  0xc8   : > { %467 = dma.vmem_to_hbm [thread:$0]  (%p693_p11), %s345_s10, 256, %s347_s13, %s331_s19   ;;  %317 = vadd.xlane.f32.xlu0 %v316_v39  ;;  %v321_v42 = vadd.f32 %v320_v41, %v319_v40  ;;  %vm325_vm5 = vcmask 7168   ;;  %v324_v45 = vld [vmem:[%s804_s4] sm:$0xff]  ;;  %vm328_vm6 = vcmask 15360  }
  0xc9   : > { %v284_v43 = vpop.f32.mrf.mxu0  ;;  %v297_v44 = vpop.f32.mrf.mxu1 }
  0xca   : > { %322 = vadd.xlane.f32.xlu1 %v321_v42 }
 0x13b   : > { %v318_v46 = vpop.xlane.xlu0 %317 }
 0x13d   : > { %v323_v47 = vpop.xlane.xlu1 %322 }
 0x13e   : > { %v326_v48 = vsel %vm325_vm5, %v318_v46, %v323_v47 }
 0x13f   : > { %v327_v49 = vadd.f32 %v326_v48, %v324_v45 }
 0x141   : > { %329 = vst.msk [vmem:[%s804_s4] sm:$0xff] %vm328_vm6, %v327_v49 }
 0x142 PF: > { %s364_s26 = sand.u32 1, %s602_s15   ;;  %p474_p11 = pnand %p425_p9, %p697_p12 }
 0x143   : > { %s365_s5 = scalar_lea.sflag [#allocation4], %s364_s26 }
 0x144   : > { %p475_p10 = pneg %p474_p11 }
 0x146   : > { %597 = dma.done.wait (%p475_p10), %s365_s5, 256  }
 0x147   : > { %599 = vsyncadd (%p475_p10), %s365_s5, 4294967040  ;;  %p18_p1 = scmp.ge.s32.totalorder %s672_s21, 4   ;;  %s809_s15 = smov %s606_s16 }
 0x148   : > { %s810_s16 = smov %s610_s17  ;;  %s811_s17 = smov %s684_s24 }
 0x149   : > { %s812_s18 = smov %s672_s21  ;;  %20 = sbr.rel (!%p18_p1) target bundleno = 5 (0x5), region = 89 }
 0x14e   :  { %371 = vsyncpa [#allocation3], 1 }
 0x14f   :  { %373 = vsyncpa [#allocation3 + $0x1], 1 }
 0x150   :  { %374 = vsyncpa [#allocation4], 1 }
 0x151   :  { %376 = vsyncpa [#allocation4 + $0x1], 1 }

</bundles_post_ra>
